<compile_context>
chip_gen: v7x
topology: tpu7x:2x2x1
jax: 0.10.0
libtpu: 0.0.40
codegen_flags: <defaults>
</compile_context>

<pallas_src>
import functools

import jax
import jax.numpy as jnp
from jax.experimental import pallas as pl
from jax.experimental.pallas import tpu as pltpu


def _round_up(x, m):
    return ((x + m - 1) // m) * m


def _cdiv(a, b):
    return -(-a // b)


# --------------------------------------------------------------------------
# Hardware queries (best effort; safe fallbacks).
# --------------------------------------------------------------------------
def _default_vmem_limit():
    try:
        cap = int(pltpu.get_tpu_info().vmem_capacity_bytes)
        if cap > 0:
            # ~75% of physical VMEM: ~96 MiB on v5e/v6e (128 MiB), ~48 MiB on v7x (64 MiB).
            return int(0.75 * cap)
    except Exception:
        pass
    return 48 * 1024 * 1024  # conservative: safe for v7x's 64 MiB physical VMEM


def _num_tensorcores():
    try:
        info = pltpu.get_tpu_info()
        for attr in ("num_cores", "tensorcores_per_chip", "num_tensorcores", "core_count"):
            v = getattr(info, attr, None)
            if isinstance(v, int) and v > 0:
                return v
    except Exception:
        pass
    try:
        kind = jax.devices()[0].device_kind.lower()
        if "v7" in kind:  # v7x: 2 TensorCores per chip
            return 2
    except Exception:
        pass
    return 1  # v5e / v6e: single TensorCore


# --------------------------------------------------------------------------
# BlockSpec helpers.
# --------------------------------------------------------------------------
def _buffered_spec(shape, index_map):
    """Single-buffered spec for a grid-invariant operand (halves its VMEM)."""
    buffered = getattr(pl, "Buffered", None)
    if buffered is not None:
        try:
            return pl.BlockSpec(shape, index_map, pipeline_mode=buffered(1))
        except TypeError:
            pass
    return pl.BlockSpec(shape, index_map)


def _row_align(in_isz, out_isz):
    # Sub-32-bit dtypes pack 2 (bf16) / 4 (fp8) rows per sublane.
    min_isz = max(1, min(in_isz, out_isz))
    return 8 * max(1, 4 // min_isz)


# --------------------------------------------------------------------------
# Tile planning.
# --------------------------------------------------------------------------
def _plan_tiles(B, D_pad, H_pad, in_isz, w_isz, out_isz, store_enc,
                vmem_limit, num_tc, row_align):
    """Pick (mode, tile_b, tile_h, grid_h).

    mode == "resident": both weight matrices live in VMEM for the whole kernel
    (single-buffered), grid = (batch_tiles,).
    mode == "htiled":   hidden dim tiled (last grid axis, "arbitrary") with an
    f32 decoder accumulator in VMEM scratch.
    """
    budget = int(0.8 * vmem_limit)  # ~20% headroom for Mosaic internals / spills
    b_al = _round_up(B, row_align)

    # ---- resident-weight path (weights single-buffered, real itemsizes) ----
    w_resident = 2 * D_pad * H_pad * w_isz + (H_pad + D_pad) * 4
    row_resident = (2 * D_pad * in_isz                              # x slab (dbl-buffered)
                    + (2 * H_pad * out_isz if store_enc else 0)     # enc slab
                    + 2 * D_pad * out_isz                           # dec slab
                    + (2 * H_pad + 2 * D_pad) * 4)                  # in-kernel f32 temps
    if w_resident + row_resident * row_align <= budget:
        tile_b = (budget - w_resident) // row_resident
        tile_b = max(row_align, (tile_b // row_align) * row_align)
        tile_b = min(tile_b, 1024)
        if tile_b >= b_al:
            if num_tc >= 2 and b_al >= 2 * row_align:
                # Split the batch so every TensorCore (v7x megacore) gets work.
                tile_b = _round_up(_cdiv(b_al, num_tc), row_align)
            else:
                # Single TC: one grid step, no extra ~0.35 us per-step overhead.
                tile_b = b_al
        return "resident", tile_b, H_pad, 1

    # ---- hidden-dim tiled path (weights too big to keep resident) ----------
    tile_b = min(b_al, _round_up(256, row_align))
    tile_h = None
    while tile_b >= row_align:
        th = H_pad
        while th >= 128:
            w_tiled = (2 * 2 * D_pad * th * w_isz        # W1/W2 tiles, double-buffered
                       + 2 * th * 4 + 2 * D_pad * 4)     # b1 (dbl), b2
            row_tiled = (2 * D_pad * in_isz
                         + (2 * th * out_isz if store_enc else 0)
                         + 2 * D_pad * out_isz
                         + D_pad * 4                     # f32 decoder accumulator
                         + (2 * th + D_pad) * 4)         # in-kernel f32 temps
            if w_tiled + row_tiled * tile_b <= budget:
                tile_h = th
                break
            th -= 128
        if tile_h is not None:
            break
        tile_b = (tile_b // 2 // row_align) * row_align  # shrink batch tile, retry
    if tile_h is None:
        # TODO(synk): for huge input_dim also tile D (x columns / decoder rows)
        # with a second accumulator; fall back to the smallest tiles here.
        tile_b, tile_h = row_align, 128
    grid_h = _cdiv(H_pad, tile_h)
    return "htiled", tile_b, tile_h, grid_h


# --------------------------------------------------------------------------
# Kernels.
# --------------------------------------------------------------------------
def _make_resident_kernel(store_enc):
    def kernel(x_ref, w1_ref, b1_ref, w2_ref, b2_ref, *out_refs):
        if store_enc:
            enc_ref, dec_ref = out_refs
        else:
            (dec_ref,) = out_refs
        # encoder: tanh(x @ W1 + b1); MXU with f32 accumulation, bias/tanh in f32.
        enc = jnp.tanh(
            jnp.dot(x_ref[...], w1_ref[...], preferred_element_type=jnp.float32)
            + b1_ref[...])
        enc_lo = enc.astype(w2_ref.dtype)  # one cast, reused for MXU and (maybe) store
        if store_enc:
            enc_ref[...] = enc_lo if enc_ref.dtype == w2_ref.dtype else enc.astype(enc_ref.dtype)
        # decoder: tanh(enc @ W2 + b2).
        dec = jnp.dot(enc_lo, w2_ref[...], preferred_element_type=jnp.float32) + b2_ref[...]
        dec_ref[...] = jnp.tanh(dec).astype(dec_ref.dtype)
    return kernel


def _make_htiled_kernel(store_enc, grid_h):
    def kernel(x_ref, w1_ref, b1_ref, w2_ref, b2_ref, *refs):
        if store_enc:
            enc_ref, dec_ref, acc_ref = refs
        else:
            dec_ref, acc_ref = refs
        h = pl.program_id(1)

        @pl.when(h == 0)
        def _():
            acc_ref[...] = jnp.zeros_like(acc_ref)

        # encoder tile: tanh(x @ W1[:, h-block] + b1[h-block])
        enc = jnp.tanh(
            jnp.dot(x_ref[...], w1_ref[...], preferred_element_type=jnp.float32)
            + b1_ref[...])
        enc_lo = enc.astype(w2_ref.dtype)
        if store_enc:
            enc_ref[...] = enc_lo if enc_ref.dtype == w2_ref.dtype else enc.astype(enc_ref.dtype)
        # decoder contraction over the hidden dim, accumulated in f32 VMEM scratch.
        acc_ref[...] += jnp.dot(enc_lo, w2_ref[...], preferred_element_type=jnp.float32)

        @pl.when(h == grid_h - 1)
        def _():
            dec_ref[...] = jnp.tanh(acc_ref[...] + b2_ref[...]).astype(dec_ref.dtype)
    return kernel


# --------------------------------------------------------------------------
# Host wrapper.
# --------------------------------------------------------------------------
def autoencoder_forward(x, w1, b1, w2, b2, *, tile_b=None, tile_h=None,
                        matmul_dtype=None, vmem_limit_bytes=None,
                        return_encoded=True, return_padded=False):
    B, D_in = x.shape
    H = w1.shape[1]
    out_dtype = x.dtype

    if vmem_limit_bytes is None:
        vmem_limit_bytes = _default_vmem_limit()

    mm_dtype = jnp.dtype(matmul_dtype) if matmul_dtype is not None else jnp.dtype(x.dtype)
    in_isz = w_isz = mm_dtype.itemsize
    out_isz = jnp.dtype(out_dtype).itemsize
    row_align = _row_align(in_isz, out_isz)

    # Lane-dense padding: feature dims to multiples of 128 (unmasked vst, full MXU tiles).
    D_pad = _round_up(D_in, 128)
    H_pad = _round_up(H, 128)

    num_tc = _num_tensorcores()
    mode, auto_tb, auto_th, grid_h = _plan_tiles(
        B, D_pad, H_pad, in_isz, w_isz, out_isz, return_encoded,
        vmem_limit_bytes, num_tc, row_align)

    if tile_h is not None:  # user override (also used to exercise the tiled path)
        auto_th = min(H_pad, _round_up(int(tile_h), 128))
        grid_h = _cdiv(H_pad, auto_th)
        if grid_h > 1:
            mode = "htiled"
    tile_h = auto_th
    if tile_b is None:
        tile_b = auto_tb
    tile_b = max(row_align, _round_up(int(tile_b), row_align))

    grid_b = _cdiv(B, tile_b)
    B_pad = grid_b * tile_b
    H_tot = grid_h * tile_h  # == H_pad when resident (grid_h == 1, tile_h == H_pad)

    def pad2(a, rows, cols):
        pr, pc = rows - a.shape[0], cols - a.shape[1]
        return jnp.pad(a, ((0, pr), (0, pc))) if (pr or pc) else a

    x_p = pad2(x, B_pad, D_pad)
    w1_p = pad2(w1, D_pad, H_tot)
    b1_p = pad2(jnp.reshape(b1, (1, -1)), 1, H_tot).astype(jnp.float32)
    w2_p = pad2(w2, H_tot, D_pad)
    b2_p = pad2(jnp.reshape(b2, (1, -1)), 1, D_pad).astype(jnp.float32)

    if matmul_dtype is not None:
        # bf16 MXU operands (v6e/v7x peak); accumulation stays f32 in-kernel.
        x_p = x_p.astype(mm_dtype)
        w1_p = w1_p.astype(mm_dtype)
        w2_p = w2_p.astype(mm_dtype)

    out_shapes, out_specs, scratch = [], [], []
    if mode == "resident":
        grid = (grid_b,)
        dims = ("parallel",)
        if return_encoded:
            out_specs.append(pl.BlockSpec((tile_b, H_tot), lambda i: (i, 0)))
            out_shapes.append(jax.ShapeDtypeStruct((B_pad, H_tot), out_dtype))
        out_specs.append(pl.BlockSpec((tile_b, D_pad), lambda i: (i, 0)))
        out_shapes.append(jax.ShapeDtypeStruct((B_pad, D_pad), out_dtype))
        kernel = _make_resident_kernel(return_encoded)
        weight_reads = 1

        def make_in_specs(single_buffer):
            cs = _buffered_spec if single_buffer else pl.BlockSpec
            return [
                pl.BlockSpec((tile_b, D_pad), lambda i: (i, 0)),   # x tile
                cs((D_pad, H_tot), lambda i: (0, 0)),              # W1 (resident)
                cs((1, H_tot), lambda i: (0, 0)),                  # b1
                cs((H_tot, D_pad), lambda i: (0, 0)),              # W2 (resident)
                cs((1, D_pad), lambda i: (0, 0)),                  # b2
            ]
    else:
        grid = (grid_b, grid_h)
        dims = ("parallel", "arbitrary")
        if return_encoded:
            out_specs.append(pl.BlockSpec((tile_b, tile_h), lambda i, h: (i, h)))
            out_shapes.append(jax.ShapeDtypeStruct((B_pad, H_tot), out_dtype))
        out_specs.append(pl.BlockSpec((tile_b, D_pad), lambda i, h: (i, 0)))
        out_shapes.append(jax.ShapeDtypeStruct((B_pad, D_pad), out_dtype))
        scratch = [pltpu.VMEM((tile_b, D_pad), jnp.float32)]       # decoder accumulator
        kernel = _make_htiled_kernel(return_encoded, grid_h)
        weight_reads = grid_b

        def make_in_specs(single_buffer):
            cs = _buffered_spec if single_buffer else pl.BlockSpec
            return [
                pl.BlockSpec((tile_b, D_pad), lambda i, h: (i, 0)),  # x tile (reused over h)
                pl.BlockSpec((D_pad, tile_h), lambda i, h: (0, h)),  # W1 hidden tile
                pl.BlockSpec((1, tile_h), lambda i, h: (0, h)),      # b1 hidden tile
                pl.BlockSpec((tile_h, D_pad), lambda i, h: (h, 0)),  # W2 hidden tile
                cs((1, D_pad), lambda i, h: (0, 0)),                 # b2 (invariant)
            ]

    out_bytes = B_pad * D_pad * out_isz + (B_pad * H_tot * out_isz if return_encoded else 0)
    cost = pl.CostEstimate(
        flops=int(4 * B_pad * D_pad * H_tot),                  # two matmuls
        transcendentals=int(B_pad * (H_tot + D_pad)),          # tanh
        bytes_accessed=int(x_p.size * x_p.dtype.itemsize
                           + weight_reads * (w1_p.size * w1_p.dtype.itemsize
                                             + w2_p.size * w2_p.dtype.itemsize)
                           + b1_p.size * 4 + b2_p.size * 4 + out_bytes),
    )

    def run(single_buffer):
        fn = pl.pallas_call(
            kernel,
            grid_spec=pltpu.PrefetchScalarGridSpec(
                num_scalar_prefetch=0,
                grid=grid,
                in_specs=make_in_specs(single_buffer),
                out_specs=out_specs,
                scratch_shapes=scratch),
            out_shape=tuple(out_shapes),
            compiler_params=pltpu.CompilerParams(
                dimension_semantics=dims,
                vmem_limit_bytes=vmem_limit_bytes),
            cost_estimate=cost,
        )
        return fn(x_p, w1_p, b1_p, w2_p, b2_p)

    try:
        outs = run(True)
    except Exception:
        # This JAX/Mosaic build does not accept Buffered(1) pipeline_mode:
        # retry with default double-buffered invariant operands.
        outs = run(False)

    if return_encoded:
        enc_p, dec_p = outs
    else:
        (dec_p,) = outs
        enc_p = None

    enc, dec = enc_p, dec_p
    if not return_padded:
        if enc is not None and (B_pad != B or H_tot != H):
            enc = enc[:B, :H]
        if B_pad != B or D_pad != D_in:
            dec = dec[:B, :D_in]
    if return_encoded:
        return enc, dec
    return dec


def init_params(key, input_dim, hidden_dim, dtype=jnp.float32):
    # Mimic PyTorch nn.Linear default init: U(-1/sqrt(fan_in), 1/sqrt(fan_in)).
    k1, k2, k3, k4 = jax.random.split(key, 4)
    bound1 = 1.0 / jnp.sqrt(input_dim)
    bound2 = 1.0 / jnp.sqrt(hidden_dim)
    w1 = jax.random.uniform(k1, (input_dim, hidden_dim), dtype, -bound1, bound1)
    b1 = jax.random.uniform(k2, (1, hidden_dim), dtype, -bound1, bound1)
    w2 = jax.random.uniform(k3, (hidden_dim, input_dim), dtype, -bound2, bound2)
    b2 = jax.random.uniform(k4, (1, input_dim), dtype, -bound2, bound2)
    return w1, b1, w2, b2


if __name__ == "__main__":
    key = jax.random.PRNGKey(0)
    kx, kp = jax.random.split(key)

    batch, input_dim, hidden_dim = 64, 32, 16
    x = jax.random.normal(kx, (batch, input_dim), dtype=jnp.float32)
    w1, b1, w2, b2 = init_params(kp, input_dim, hidden_dim)

    # Default path: resident weights, auto-sized batch tile.
    enc, dec = autoencoder_forward(x, w1, b1, w2, b2)
    jax.block_until_ready((enc, dec))

    enc_ref = jnp.tanh(x @ w1 + b1)
    dec_ref = jnp.tanh(enc_ref @ w2 + b2)
    assert enc.shape == (batch, hidden_dim) and dec.shape == (batch, input_dim)
    assert jnp.allclose(enc, enc_ref, atol=1e-5, rtol=1e-5)
    assert jnp.allclose(dec, dec_ref, atol=1e-5, rtol=1e-5)

    # Exercise the hidden-dim-tiled fallback path (f32 decoder accumulator, grid_h > 1).
    hidden_dim2 = 256
    w1b, b1b, w2b, b2b = init_params(jax.random.PRNGKey(1), input_dim, hidden_dim2)
    enc2, dec2 = autoencoder_forward(x, w1b, b1b, w2b, b2b, tile_h=128)
    jax.block_until_ready((enc2, dec2))
    enc2_ref = jnp.tanh(x @ w1b + b1b)
    dec2_ref = jnp.tanh(enc2_ref @ w2b + b2b)
    assert enc2.shape == (batch, hidden_dim2) and dec2.shape == (batch, input_dim)
    assert jnp.allclose(enc2, enc2_ref, atol=1e-5, rtol=1e-5)
    assert jnp.allclose(dec2, dec2_ref, atol=1e-5, rtol=1e-5)

    print("KERNEL_OK")
</pallas_src>

<mosaic_0001>
module attributes {stable_mosaic.version = 11 : i64} {
  func.func @kernel(%arg0: i32, %arg1: memref<64x128xf32, #tpu.memory_space<vmem>>, %arg2: memref<128x128xf32, #tpu.memory_space<vmem>>, %arg3: memref<1x128xf32, #tpu.memory_space<vmem>>, %arg4: memref<128x128xf32, #tpu.memory_space<vmem>>, %arg5: memref<1x128xf32, #tpu.memory_space<vmem>>, %arg6: memref<64x128xf32, #tpu.memory_space<vmem>>, %arg7: memref<64x128xf32, #tpu.memory_space<vmem>>) attributes {dimension_semantics = [#tpu.dimension_semantics<parallel>], iteration_bounds = array<i64: 1>, scalar_prefetch = 0 : i64, scratch_operands = 0 : i64, tpu.core_type = #tpu.core_type<tc>, window_params = [{transform_indices = @transform_0, window_bounds = array<i64: 64, 128>}, {pipeline_mode = #tpu.pipeline_mode<synchronous>, transform_indices = @transform_1, window_bounds = array<i64: 128, 128>}, {pipeline_mode = #tpu.pipeline_mode<synchronous>, transform_indices = @transform_2, window_bounds = array<i64: 1, 128>}, {pipeline_mode = #tpu.pipeline_mode<synchronous>, transform_indices = @transform_3, window_bounds = array<i64: 128, 128>}, {pipeline_mode = #tpu.pipeline_mode<synchronous>, transform_indices = @transform_4, window_bounds = array<i64: 1, 128>}, {transform_indices = @transform_5, window_bounds = array<i64: 64, 128>}, {transform_indices = @transform_6, window_bounds = array<i64: 64, 128>}]} {
    %c0 = arith.constant 0 : index
    %c0_0 = arith.constant 0 : index
    %0 = vector.load %arg1[%c0, %c0_0] : memref<64x128xf32, #tpu.memory_space<vmem>>, vector<64x128xf32>
    %c0_1 = arith.constant 0 : index
    %c0_2 = arith.constant 0 : index
    %1 = vector.load %arg2[%c0_1, %c0_2] : memref<128x128xf32, #tpu.memory_space<vmem>>, vector<128x128xf32>
    %cst = arith.constant dense<0.000000e+00> : vector<64x128xf32>
    %2 = tpu.matmul %0, %1, %cst {dimension_numbers = #tpu.dot_dimension_numbers<[1], [0], [0], [1], [0, 0, 1, 1], [], []>} : vector<64x128xf32>, vector<128x128xf32>, vector<64x128xf32> -> vector<64x128xf32>
    %c0_3 = arith.constant 0 : index
    %c0_4 = arith.constant 0 : index
    %3 = vector.load %arg3[%c0_3, %c0_4] : memref<1x128xf32, #tpu.memory_space<vmem>>, vector<1x128xf32>
    %4 = vector.broadcast %3 : vector<1x128xf32> to vector<64x128xf32>
    %5 = arith.addf %2, %4 : vector<64x128xf32>
    %6 = math.tanh %5 : vector<64x128xf32>
    %c0_5 = arith.constant 0 : index
    %c0_6 = arith.constant 0 : index
    %7 = vector.load %arg6[%c0_5, %c0_6] : memref<64x128xf32, #tpu.memory_space<vmem>>, vector<64x128xf32>
    tpu.vector_store %arg6[%c0_5, %c0_6], %6 {strides = array<i32>} : memref<64x128xf32, #tpu.memory_space<vmem>>, vector<64x128xf32>,
    %c0_7 = arith.constant 0 : index
    %c0_8 = arith.constant 0 : index
    %8 = vector.load %arg4[%c0_7, %c0_8] : memref<128x128xf32, #tpu.memory_space<vmem>>, vector<128x128xf32>
    %cst_9 = arith.constant dense<0.000000e+00> : vector<64x128xf32>
    %9 = tpu.matmul %6, %8, %cst_9 {dimension_numbers = #tpu.dot_dimension_numbers<[1], [0], [0], [1], [0, 0, 1, 1], [], []>} : vector<64x128xf32>, vector<128x128xf32>, vector<64x128xf32> -> vector<64x128xf32>
    %c0_10 = arith.constant 0 : index
    %c0_11 = arith.constant 0 : index
    %10 = vector.load %arg5[%c0_10, %c0_11] : memref<1x128xf32, #tpu.memory_space<vmem>>, vector<1x128xf32>
    %11 = vector.broadcast %10 : vector<1x128xf32> to vector<64x128xf32>
    %12 = arith.addf %9, %11 : vector<64x128xf32>
    %13 = math.tanh %12 : vector<64x128xf32>
    %c0_12 = arith.constant 0 : index
    %c0_13 = arith.constant 0 : index
    %14 = vector.load %arg7[%c0_12, %c0_13] : memref<64x128xf32, #tpu.memory_space<vmem>>, vector<64x128xf32>
    tpu.vector_store %arg7[%c0_12, %c0_13], %13 {strides = array<i32>} : memref<64x128xf32, #tpu.memory_space<vmem>>, vector<64x128xf32>,
    return
  }
  func.func @transform_0(%arg0: i32) -> (i32, i32) {
    %c0_i32 = arith.constant 0 : i32
    %c0_i32_0 = arith.constant 0 : i32
    return %arg0, %c0_i32 : i32, i32
  }
  func.func @transform_1(%arg0: i32) -> (i32, i32) {
    %c0_i32 = arith.constant 0 : i32
    %c0_i32_0 = arith.constant 0 : i32
    %c0_i32_1 = arith.constant 0 : i32
    return %c0_i32, %c0_i32_0 : i32, i32
  }
  func.func @transform_2(%arg0: i32) -> (i32, i32) {
    %c0_i32 = arith.constant 0 : i32
    %c0_i32_0 = arith.constant 0 : i32
    %c0_i32_1 = arith.constant 0 : i32
    return %c0_i32, %c0_i32_0 : i32, i32
  }
  func.func @transform_3(%arg0: i32) -> (i32, i32) {
    %c0_i32 = arith.constant 0 : i32
    %c0_i32_0 = arith.constant 0 : i32
    %c0_i32_1 = arith.constant 0 : i32
    return %c0_i32, %c0_i32_0 : i32, i32
  }
  func.func @transform_4(%arg0: i32) -> (i32, i32) {
    %c0_i32 = arith.constant 0 : i32
    %c0_i32_0 = arith.constant 0 : i32
    %c0_i32_1 = arith.constant 0 : i32
    return %c0_i32, %c0_i32_0 : i32, i32
  }
  func.func @transform_5(%arg0: i32) -> (i32, i32) {
    %c0_i32 = arith.constant 0 : i32
    %c0_i32_0 = arith.constant 0 : i32
    return %arg0, %c0_i32 : i32, i32
  }
  func.func @transform_6(%arg0: i32) -> (i32, i32) {
    %c0_i32 = arith.constant 0 : i32
    %c0_i32_0 = arith.constant 0 : i32
    return %arg0, %c0_i32 : i32, i32
  }
}

module attributes {stable_mosaic.version = 11 : i64} {
  func.func @kernel(%arg0: i32, %arg1: memref<64x128xf32, #tpu.memory_space<vmem>>, %arg2: memref<128x128xf32, #tpu.memory_space<vmem>>, %arg3: memref<1x128xf32, #tpu.memory_space<vmem>>, %arg4: memref<128x128xf32, #tpu.memory_space<vmem>>, %arg5: memref<1x128xf32, #tpu.memory_space<vmem>>, %arg6: memref<64x128xf32, #tpu.memory_space<vmem>>, %arg7: memref<64x128xf32, #tpu.memory_space<vmem>>) attributes {dimension_semantics = [#tpu.dimension_semantics<parallel>], iteration_bounds = array<i64: 1>, scalar_prefetch = 0 : i64, scratch_operands = 0 : i64, tpu.core_type = #tpu.core_type<tc>, window_params = [{transform_indices = @transform_0, window_bounds = array<i64: 64, 128>}, {pipeline_mode = #tpu.pipeline_mode<synchronous>, transform_indices = @transform_1, window_bounds = array<i64: 128, 128>}, {pipeline_mode = #tpu.pipeline_mode<synchronous>, transform_indices = @transform_2, window_bounds = array<i64: 1, 128>}, {pipeline_mode = #tpu.pipeline_mode<synchronous>, transform_indices = @transform_3, window_bounds = array<i64: 128, 128>}, {pipeline_mode = #tpu.pipeline_mode<synchronous>, transform_indices = @transform_4, window_bounds = array<i64: 1, 128>}, {transform_indices = @transform_5, window_bounds = array<i64: 64, 128>}, {transform_indices = @transform_6, window_bounds = array<i64: 64, 128>}]} {
    %c0 = arith.constant 0 : index
    %c0_0 = arith.constant 0 : index
    %0 = vector.load %arg1[%c0, %c0_0] : memref<64x128xf32, #tpu.memory_space<vmem>>, vector<64x128xf32>
    %c0_1 = arith.constant 0 : index
    %c0_2 = arith.constant 0 : index
    %1 = vector.load %arg2[%c0_1, %c0_2] : memref<128x128xf32, #tpu.memory_space<vmem>>, vector<128x128xf32>
    %cst = arith.constant dense<0.000000e+00> : vector<64x128xf32>
    %2 = tpu.matmul %0, %1, %cst {dimension_numbers = #tpu.dot_dimension_numbers<[1], [0], [0], [1], [0, 0, 1, 1], [], []>} : vector<64x128xf32>, vector<128x128xf32>, vector<64x128xf32> -> vector<64x128xf32>
    %c0_3 = arith.constant 0 : index
    %c0_4 = arith.constant 0 : index
    %3 = vector.load %arg3[%c0_3, %c0_4] : memref<1x128xf32, #tpu.memory_space<vmem>>, vector<1x128xf32>
    %4 = vector.broadcast %3 : vector<1x128xf32> to vector<64x128xf32>
    %5 = arith.addf %2, %4 : vector<64x128xf32>
    %6 = math.tanh %5 : vector<64x128xf32>
    %c0_5 = arith.constant 0 : index
    %c0_6 = arith.constant 0 : index
    %7 = vector.load %arg6[%c0_5, %c0_6] : memref<64x128xf32, #tpu.memory_space<vmem>>, vector<64x128xf32>
    tpu.vector_store %arg6[%c0_5, %c0_6], %6 {strides = array<i32>} : memref<64x128xf32, #tpu.memory_space<vmem>>, vector<64x128xf32>,
    %c0_7 = arith.constant 0 : index
    %c0_8 = arith.constant 0 : index
    %8 = vector.load %arg4[%c0_7, %c0_8] : memref<128x128xf32, #tpu.memory_space<vmem>>, vector<128x128xf32>
    %cst_9 = arith.constant dense<0.000000e+00> : vector<64x128xf32>
    %9 = tpu.matmul %6, %8, %cst_9 {dimension_numbers = #tpu.dot_dimension_numbers<[1], [0], [0], [1], [0, 0, 1, 1], [], []>} : vector<64x128xf32>, vector<128x128xf32>, vector<64x128xf32> -> vector<64x128xf32>
    %c0_10 = arith.constant 0 : index
    %c0_11 = arith.constant 0 : index
    %10 = vector.load %arg5[%c0_10, %c0_11] : memref<1x128xf32, #tpu.memory_space<vmem>>, vector<1x128xf32>
    %11 = vector.broadcast %10 : vector<1x128xf32> to vector<64x128xf32>
    %12 = arith.addf %9, %11 : vector<64x128xf32>
    %13 = math.tanh %12 : vector<64x128xf32>
    %c0_12 = arith.constant 0 : index
    %c0_13 = arith.constant 0 : index
    %14 = vector.load %arg7[%c0_12, %c0_13] : memref<64x128xf32, #tpu.memory_space<vmem>>, vector<64x128xf32>
    tpu.vector_store %arg7[%c0_12, %c0_13], %13 {strides = array<i32>} : memref<64x128xf32, #tpu.memory_space<vmem>>, vector<64x128xf32>,
    return
  }
  func.func @transform_0(%arg0: i32) -> (i32, i32) {
    %c0_i32 = arith.constant 0 : i32
    %c0_i32_0 = arith.constant 0 : i32
    return %arg0, %c0_i32 : i32, i32
  }
  func.func @transform_1(%arg0: i32) -> (i32, i32) {
    %c0_i32 = arith.constant 0 : i32
    %c0_i32_0 = arith.constant 0 : i32
    %c0_i32_1 = arith.constant 0 : i32
    return %c0_i32, %c0_i32_0 : i32, i32
  }
  func.func @transform_2(%arg0: i32) -> (i32, i32) {
    %c0_i32 = arith.constant 0 : i32
    %c0_i32_0 = arith.constant 0 : i32
    %c0_i32_1 = arith.constant 0 : i32
    return %c0_i32, %c0_i32_0 : i32, i32
  }
  func.func @transform_3(%arg0: i32) -> (i32, i32) {
    %c0_i32 = arith.constant 0 : i32
    %c0_i32_0 = arith.constant 0 : i32
    %c0_i32_1 = arith.constant 0 : i32
    return %c0_i32, %c0_i32_0 : i32, i32
  }
  func.func @transform_4(%arg0: i32) -> (i32, i32) {
    %c0_i32 = arith.constant 0 : i32
    %c0_i32_0 = arith.constant 0 : i32
    %c0_i32_1 = arith.constant 0 : i32
    return %c0_i32, %c0_i32_0 : i32, i32
  }
  func.func @transform_5(%arg0: i32) -> (i32, i32) {
    %c0_i32 = arith.constant 0 : i32
    %c0_i32_0 = arith.constant 0 : i32
    return %arg0, %c0_i32 : i32, i32
  }
  func.func @transform_6(%arg0: i32) -> (i32, i32) {
    %c0_i32 = arith.constant 0 : i32
    %c0_i32_0 = arith.constant 0 : i32
    return %arg0, %c0_i32 : i32, i32
  }
}

</mosaic_0001>

<bundles_post_ra>
// kernel: tpu_custom_call.1
= control target key start
LH: loop header
LB: loop body
LE: loop exit
PB: predicated region body
PF: predicated region fallthrough
CT: control target
= control target key end

     0   :  { %12 = vsyncpa [#allocation3], 0  ;;  %s884_s0 = inlined_call_operand.hbm [shape: f32[64,128], index: 0, kind: input, shape index: {}]   ;;  %s885_s1 = inlined_call_operand.hbm [shape: f32[128,128], index: 1, kind: input, shape index: {}]   ;;  %s886_s2 = inlined_call_operand.vmem [shape: f32[1,128], index: 2, kind: input, shape index: {}]   ;;  %s887_s3 = inlined_call_operand.hbm [shape: f32[128,128], index: 3, kind: input, shape index: {}]   ;;  %s888_s4 = inlined_call_operand.vmem [shape: f32[1,128], index: 4, kind: input, shape index: {}]   ;;  %s889_s5 = inlined_call_operand.hbm [shape: f32[64,128], index: 5, kind: output, shape index: {0}]   ;;  %s890_s6 = inlined_call_operand.hbm [shape: f32[64,128], index: 6, kind: output, shape index: {1}]  }
   0x1   :  { %13 = vsyncpa [#allocation6], 0 }
   0x2   :  { %14 = vsyncpa [#allocation4], 0 }
   0x3   :  { %15 = vsyncpa [#allocation10], 0  ;;  %s754_s21 = smov [#allocation5]   ;;  %s755_s23 = smov [#allocation2]  }
   0x4   :  { %s33_s22 = sshll.u32 %s754_s21, 4  ;;  %s21_s24 = sshll.u32 %s755_s23, 4  ;;  %s34_s22 = int_to_ptr.vmem [resolvable:$true] %s33_s22  ;;  %s796_s24 = int_to_ptr.vmem [resolvable:$true] %s21_s24 }
   0x5   :  { %s636_s27 = scalar_lea.hbm %s885_s1, 2048 }
   0x6   :  { %p637_p0 = scmp.ne.s32.totalorder %s885_s1, %s636_s27  ;;  %p640_p1 = scmp.lt.u32.totalorder %s636_s27, %s885_s1 }
   0x8   :  { %p642_p2 = pnand %p640_p1, %p637_p0 }
   0xa   :  { %645 = shalt.err (!%p642_p2)
}
   0xb   :  { %s646_s8 = scalar_lea.vmem %s34_s22, 2048  ;;  %p651_p4 = scmp.lt.s32.totalorder %s34_s22, %s34_s22 }
   0xc   :  { %p647_p3 = scmp.ne.s32.totalorder %s34_s22, %s646_s8  ;;  %p652_p5 = scmp.lt.s32.totalorder %s646_s8, %s646_s8 }
   0xe   :  { %p653_p6 = por %p652_p5, %p651_p4 }
  0x10   :  { %p654_p7 = pnand %p653_p6, %p647_p3 }
  0x12   :  { %657 = shalt.err (!%p654_p7)
}
  0x13   :  { %s756_s9 = smov 128   ;;  %s757_s10 = smov 8  }
  0x14   :  { %39 = dma.hbm_to_vmem [thread:$0]  %s885_s1, 2048, %s34_s22, [#allocation6], %s756_s9, %s756_s9, %s757_s10  }
  0x15   :  { %s658_s15 = scalar_lea.hbm %s884_s0, 1024 }
  0x16   :  { %p659_p8 = scmp.ne.s32.totalorder %s884_s0, %s658_s15  ;;  %p662_p9 = scmp.lt.u32.totalorder %s658_s15, %s884_s0 }
  0x18   :  { %p664_p10 = pnand %p662_p9, %p659_p8 }
  0x1a   :  { %667 = shalt.err (!%p664_p10)
}
  0x1b   :  { %s668_s20 = scalar_lea.vmem %s796_s24, 1024  ;;  %p673_p12 = scmp.lt.s32.totalorder %s796_s24, %s796_s24 }
  0x1c   :  { %p669_p11 = scmp.ne.s32.totalorder %s796_s24, %s668_s20  ;;  %p674_p13 = scmp.lt.s32.totalorder %s668_s20, %s668_s20 }
  0x1e   :  { %p675_p0 = por %p674_p13, %p673_p12 }
  0x20   :  { %p676_p1 = pnand %p675_p0, %p669_p11 }
  0x22   :  { %679 = shalt.err (!%p676_p1)
}
  0x23   :  { %27 = dma.hbm_to_vmem [thread:$0]  %s884_s0, 1024, %s796_s24, [#allocation3], %s756_s9, %s756_s9, %s757_s10  }
  0x24   :  { %s758_s22 = smov [#allocation7]   ;;  %s680_s27 = scalar_lea.hbm %s887_s3, 2048 }
  0x25   :  { %s47_s23 = sshll.u32 %s758_s22, 4  ;;  %p681_p2 = scmp.ne.s32.totalorder %s887_s3, %s680_s27  ;;  %s48_s23 = int_to_ptr.vmem [resolvable:$true] %s47_s23 }
  0x26   :  { %p684_p3 = scmp.lt.u32.totalorder %s680_s27, %s887_s3 }
  0x28   :  { %p686_p4 = pnand %p684_p3, %p681_p2 }
  0x2a   :  { %689 = shalt.err (!%p686_p4)
}
  0x2b   :  { %s690_s8 = scalar_lea.vmem %s48_s23, 2048  ;;  %p695_p6 = scmp.lt.s32.totalorder %s48_s23, %s48_s23 }
  0x2c   :  { %p691_p5 = scmp.ne.s32.totalorder %s48_s23, %s690_s8  ;;  %p696_p7 = scmp.lt.s32.totalorder %s690_s8, %s690_s8 }
  0x2e   :  { %p697_p8 = por %p696_p7, %p695_p6 }
  0x30   :  { %p698_p9 = pnand %p697_p8, %p691_p5 }
  0x32   :  { %701 = shalt.err (!%p698_p9)
}
  0x33   :  { %53 = dma.hbm_to_vmem [thread:$0]  %s887_s3, 2048, %s48_s23, [#allocation6], %s756_s9, %s756_s9, %s757_s10  }
  0x34   :  { %746 = dma.done.wait [#allocation3], 1024  }
  0x35   :  { %747 = vsyncadd [#allocation3], 4294966272 }
  0x36   :  { %748 = dma.done.wait [#allocation6], 4096  }
  0x37   :  { %749 = vsyncadd [#allocation6], 4294963200  ;;  %v73_v0 = vld [vmem:[#allocation5] sm:$0xff]  ;;  %v74_v1 = vld [vmem:[#allocation5 + $0x8] sm:$0xff] }
  0x38   :  { %v75_v2 = vld [vmem:[#allocation5 + $0x10] sm:$0xff]  ;;  %v533_v3 = vpack.c.bf16 %v74_v1, %v73_v0  ;;  %v76_v4 = vld [vmem:[#allocation5 + $0x18] sm:$0xff]  ;;  %v77_v6 = vld [vmem:[#allocation5 + $0x20] sm:$0xff] }
  0x39   :  { %v537_v5 = vpack.c.bf16 %v76_v4, %v75_v2  ;;  %v78_v7 = vld [vmem:[#allocation5 + $0x28] sm:$0xff]  ;;  %v65_v9 = vld [vmem:[#allocation2] sm:$0xff]  ;;  %v79_v10 = vld [vmem:[#allocation5 + $0x30] sm:$0xff] }
  0x3a   :  { %534 = vmatprep.subr.bf16.mxu0 %v533_v3  ;;  %v541_v8 = vpack.c.bf16 %v78_v7, %v77_v6  ;;  %v80_v11 = vld [vmem:[#allocation5 + $0x38] sm:$0xff]  ;;  %477 = vmatprep.mubr.f32.mxu0 %v65_v9  ;;  %v217_v12 = vld [vmem:[#allocation7] sm:$0xff]  ;;  %v218_v13 = vld [vmem:[#allocation7 + $0x8] sm:$0xff] }
  0x3b   :  { %536 = vmatpush3.bf16.msra.mxu0 %v533_v3  ;;  %v219_v14 = vld [vmem:[#allocation7 + $0x10] sm:$0xff]  ;;  %v545_v15 = vpack.c.bf16 %v80_v11, %v79_v10  ;;  %v81_v16 = vld [vmem:[#allocation5 + $0x40] sm:$0xff]  ;;  %v565_v17 = vpack.c.bf16 %v218_v13, %v217_v12  ;;  %v220_v18 = vld [vmem:[#allocation7 + $0x18] sm:$0xff] }
  0x3c   :  { %538 = vmatprep.subr.bf16.mxu0 %v537_v5  ;;  %v82_v19 = vld [vmem:[#allocation5 + $0x48] sm:$0xff]  ;;  %v569_v20 = vpack.c.bf16 %v220_v18, %v219_v14  ;;  %v221_v21 = vld [vmem:[#allocation7 + $0x20] sm:$0xff]  ;;  %v83_v24 = vld [vmem:[#allocation5 + $0x50] sm:$0xff] }
  0x3d   :  { %v222_v22 = vld [vmem:[#allocation7 + $0x28] sm:$0xff]  ;;  %566 = vmatprep.subr.bf16.mxu1 %v565_v17  ;;  %v549_v23 = vpack.c.bf16 %v82_v19, %v81_v16  ;;  %v84_v26 = vld [vmem:[#allocation5 + $0x58] sm:$0xff]  ;;  %v223_v27 = vld [vmem:[#allocation7 + $0x30] sm:$0xff] }
  0x3e   :  { %568 = vmatpush3.bf16.msra.mxu1 %v565_v17  ;;  %v573_v25 = vpack.c.bf16 %v222_v22, %v221_v21  ;;  %v224_v28 = vld [vmem:[#allocation7 + $0x38] sm:$0xff]  ;;  %v553_v29 = vpack.c.bf16 %v84_v26, %v83_v24  ;;  %v85_v31 = vld [vmem:[#allocation5 + $0x60] sm:$0xff]  ;;  %v86_v32 = vld [vmem:[#allocation5 + $0x68] sm:$0xff] }
  0x3f   :  { %540 = vmatpush3.bf16.msra.mxu0 %v537_v5  ;;  %570 = vmatprep.subr.bf16.mxu1 %v569_v20  ;;  %v577_v30 = vpack.c.bf16 %v224_v28, %v223_v27  ;;  %v557_v33 = vpack.c.bf16 %v86_v32, %v85_v31  ;;  %v87_v34 = vld [vmem:[#allocation5 + $0x70] sm:$0xff]  ;;  %v88_v35 = vld [vmem:[#allocation5 + $0x78] sm:$0xff]  ;;  %v66_v37 = vld [vmem:[#allocation2 + $0x8] sm:$0xff] }
  0x40   :  { %542 = vmatprep.subr.bf16.mxu0 %v541_v8  ;;  %v561_v36 = vpack.c.bf16 %v88_v35, %v87_v34  ;;  %v67_v38 = vld [vmem:[#allocation2 + $0x10] sm:$0xff]  ;;  %v68_v39 = vld [vmem:[#allocation2 + $0x18] sm:$0xff]  ;;  %v69_v40 = vld [vmem:[#allocation2 + $0x20] sm:$0xff] }
  0x41   :  { %v70_v41 = vld [vmem:[#allocation2 + $0x28] sm:$0xff]  ;;  %v71_v42 = vld [vmem:[#allocation2 + $0x30] sm:$0xff]  ;;  %v72_v43 = vld [vmem:[#allocation2 + $0x38] sm:$0xff] }
  0x42   :  { %572 = vmatpush3.bf16.msra.mxu1 %v569_v20  ;;  %v225_v44 = vld [vmem:[#allocation7 + $0x40] sm:$0xff]  ;;  %v226_v45 = vld [vmem:[#allocation7 + $0x48] sm:$0xff]  ;;  %v227_v47 = vld [vmem:[#allocation7 + $0x50] sm:$0xff] }
  0x43   :  { %544 = vmatpush3.bf16.msra.mxu0 %v541_v8  ;;  %574 = vmatprep.subr.bf16.mxu1 %v573_v25  ;;  %v581_v46 = vpack.c.bf16 %v226_v45, %v225_v44  ;;  %v228_v48 = vld [vmem:[#allocation7 + $0x58] sm:$0xff]  ;;  %v229_v50 = vld [vmem:[#allocation7 + $0x60] sm:$0xff]  ;;  %v230_v51 = vld [vmem:[#allocation7 + $0x68] sm:$0xff] }
  0x44   :  { %546 = vmatprep.subr.bf16.mxu0 %v545_v15  ;;  %v585_v49 = vpack.c.bf16 %v228_v48, %v227_v47  ;;  %v589_v52 = vpack.c.bf16 %v230_v51, %v229_v50  ;;  %v231_v53 = vld [vmem:[#allocation7 + $0x70] sm:$0xff]  ;;  %v232_v54 = vld [vmem:[#allocation7 + $0x78] sm:$0xff]  ;;  %v395_v56 = vld [vmem:[%s886_s2] ss:$0 sm:$0xff]  ;;  %s759_s2 = smov [#allocation8]  }
  0x45   :  { %v593_v55 = vpack.c.bf16 %v232_v54, %v231_v53  ;;  %s366_s12 = sshll.u32 %s759_s2, 4  ;;  %s367_s12 = int_to_ptr.vmem [resolvable:$true] %s366_s12 }
  0x46   :  { %576 = vmatpush3.bf16.msra.mxu1 %v573_v25  ;;  %s702_s13 = scalar_lea.vmem %s367_s12, 1024  ;;  %p707_p11 = scmp.lt.s32.totalorder %s367_s12, %s367_s12 }
  0x47   :  { %548 = vmatpush3.bf16.msra.mxu0 %v545_v15  ;;  %578 = vmatprep.subr.bf16.mxu1 %v577_v30  ;;  %p703_p10 = scmp.ne.s32.totalorder %s367_s12, %s702_s13  ;;  %p708_p12 = scmp.lt.s32.totalorder %s702_s13, %s702_s13 }
  0x48   :  { %550 = vmatprep.subr.bf16.mxu0 %v549_v23 }
  0x49   :  { %p709_p13 = por %p708_p12, %p707_p11 }
  0x4a   :  { %580 = vmatpush3.bf16.msra.mxu1 %v577_v30 }
  0x4b   :  { %552 = vmatpush3.bf16.msra.mxu0 %v549_v23  ;;  %582 = vmatprep.subr.bf16.mxu1 %v581_v46  ;;  %p710_p0 = pnand %p709_p13, %p703_p10 }
  0x4c   :  { %554 = vmatprep.subr.bf16.mxu0 %v553_v29 }
  0x4e   :  { %584 = vmatpush3.bf16.msra.mxu1 %v581_v46 }
  0x4f   :  { %556 = vmatpush3.bf16.msra.mxu0 %v553_v29  ;;  %586 = vmatprep.subr.bf16.mxu1 %v585_v49 }
  0x50   :  { %558 = vmatprep.subr.bf16.mxu0 %v557_v33 }
  0x52   :  { %588 = vmatpush3.bf16.msra.mxu1 %v585_v49 }
  0x53   :  { %560 = vmatpush3.bf16.msra.mxu0 %v557_v33  ;;  %590 = vmatprep.subr.bf16.mxu1 %v589_v52 }
  0x54   :  { %562 = vmatprep.subr.bf16.mxu0 %v561_v36 }
  0x56   :  { %592 = vmatpush3.bf16.msra.mxu1 %v589_v52 }
  0x57   :  { %564 = vmatpush3.bf16.msra.mxu0 %v561_v36  ;;  %594 = vmatprep.subr.bf16.mxu1 %v593_v55 }
  0x5a   :  { %478 = vmatmul.mubr.f32.vlgmr.msra.gmra.mrb[0].mxu0 %v66_v37  ;;  %596 = vmatpush3.bf16.msra.mxu1 %v593_v55 }
  0x5b   :  { %480 = vmatprep.mubr.f32.mxu0 %v67_v38 }
  0x5e   :  { %481 = vmatmul.mubr.f32.gmra.mrb[2].mxu0 %v68_v39 }
  0x5f   :  { %483 = vmatprep.mubr.f32.mxu0 %v69_v40 }
  0x62   :  { %484 = vmatmul.mubr.f32.gmra.mrb[4].mxu0 %v70_v41 }
  0x63   :  { %486 = vmatprep.mubr.f32.mxu0 %v71_v42 }
  0x66   :  { %487 = vmatmul.mubr.f32.gmra.mrb[6].mxu0 %v72_v43 }
 0x12d   :  { %v479_v57 = vpop.f32.mrb[0].mxu0 }
 0x12e   :  { %v168_v58 = vadd.f32 %v479_v57, %v395_v56  ;;  %v162_v59 = vpop.f32.mrb[1].mxu0 }
 0x12f   :  { %v163_v60 = vadd.f32 %v395_v56, %v162_v59 }
 0x130   :  { %604 = vtanh.f32 %v168_v58 }
 0x131   :  { %606 = vtanh.f32 %v163_v60  ;;  %v482_v61 = vpop.f32.mrb[2].mxu0 }
 0x132   :  { %v178_v62 = vadd.f32 %v482_v61, %v395_v56  ;;  %v172_v63 = vpop.f32.mrb[3].mxu0 }
 0x133   :  { %v173_v0 = vadd.f32 %v395_v56, %v172_v63 }
 0x134   :  { %608 = vtanh.f32 %v178_v62 }
 0x135   :  { %610 = vtanh.f32 %v173_v0  ;;  %v485_v1 = vpop.f32.mrb[4].mxu0 }
 0x136   :  { %v188_v2 = vadd.f32 %v485_v1, %v395_v56  ;;  %v182_v3 = vpop.f32.mrb[5].mxu0 }
 0x137   :  { %v183_v4 = vadd.f32 %v395_v56, %v182_v3 }
 0x138   :  { %612 = vtanh.f32 %v188_v2 }
 0x139   :  { %614 = vtanh.f32 %v183_v4  ;;  %v488_v5 = vpop.f32.mrb[6].mxu0 }
 0x13a   :  { %v605_v6 = vpop.eup %604  ;;  %v198_v7 = vadd.f32 %v488_v5, %v395_v56  ;;  %v192_v8 = vpop.f32.mrb[7].mxu0 }
 0x13b   :  { %v607_v9 = vpop.eup %606  ;;  %210 = vst [vmem:[#allocation8 + $0x8] sm:$0xff] %v605_v6  ;;  %v193_v10 = vadd.f32 %v395_v56, %v192_v8 }
 0x13c   :  { %209 = vst [vmem:[#allocation8] sm:$0xff] %v607_v9  ;;  %616 = vtanh.f32 %v198_v7  ;;  %521 = vmatprep.mubr.f32.mxu1 %v607_v9 }
 0x13d   :  { %618 = vtanh.f32 %v193_v10  ;;  %522 = vmatmul.mubr.f32.vlgmr.msra.gmra.mrb[0].mxu1 %v605_v6 }
 0x13e   :  { %v609_v11 = vpop.eup %608 }
 0x13f   :  { %v611_v12 = vpop.eup %610  ;;  %212 = vst [vmem:[#allocation8 + $0x18] sm:$0xff] %v609_v11 }
 0x140   :  { %211 = vst [vmem:[#allocation8 + $0x10] sm:$0xff] %v611_v12  ;;  %524 = vmatprep.mubr.f32.mxu1 %v611_v12 }
 0x141   :  { %525 = vmatmul.mubr.f32.gmra.mrb[2].mxu1 %v609_v11 }
 0x142   :  { %v613_v13 = vpop.eup %612 }
 0x143   :  { %v615_v14 = vpop.eup %614  ;;  %214 = vst [vmem:[#allocation8 + $0x28] sm:$0xff] %v613_v13 }
 0x144   :  { %213 = vst [vmem:[#allocation8 + $0x20] sm:$0xff] %v615_v14  ;;  %527 = vmatprep.mubr.f32.mxu1 %v615_v14 }
 0x145   :  { %528 = vmatmul.mubr.f32.gmra.mrb[4].mxu1 %v613_v13 }
 0x146   :  { %v617_v15 = vpop.eup %616 }
 0x147   :  { %v619_v16 = vpop.eup %618  ;;  %216 = vst [vmem:[#allocation8 + $0x38] sm:$0xff] %v617_v15 }
 0x148   :  { %215 = vst [vmem:[#allocation8 + $0x30] sm:$0xff] %v619_v16  ;;  %530 = vmatprep.mubr.f32.mxu1 %v619_v16 }
 0x149   :  { %531 = vmatmul.mubr.f32.gmra.mrb[6].mxu1 %v617_v15 }
 0x14a   :  { %713 = shalt.err (!%p710_p0)
}
 0x14b   :  { %s714_s16 = scalar_lea.hbm %s889_s5, 1024 }
 0x14c   :  { %p715_p1 = scmp.ne.s32.totalorder %s889_s5, %s714_s16  ;;  %p718_p2 = scmp.lt.u32.totalorder %s714_s16, %s889_s5 }
 0x14e   :  { %p720_p3 = pnand %p718_p2, %p715_p1 }
 0x150   :  { %723 = shalt.err (!%p720_p3)
}
 0x151   :  { %372 = dma.vmem_to_hbm [thread:$0]  %s367_s12, 1024, %s889_s5, [#allocation4], %s756_s9, %s756_s9, %s757_s10  }
 0x152   :  { %v396_v17 = vld [vmem:[%s888_s4] ss:$0 sm:$0xff]  ;;  %s760_s4 = smov [#allocation9]  }
 0x153   :  { %s378_s5 = sshll.u32 %s760_s4, 4  ;;  %s379_s5 = int_to_ptr.vmem [resolvable:$true] %s378_s5 }
 0x154   :  { %s724_s25 = scalar_lea.vmem %s379_s5, 1024  ;;  %p729_p5 = scmp.lt.s32.totalorder %s379_s5, %s379_s5 }
 0x155   :  { %p725_p4 = scmp.ne.s32.totalorder %s379_s5, %s724_s25  ;;  %p730_p6 = scmp.lt.s32.totalorder %s724_s25, %s724_s25 }
 0x157   :  { %p731_p7 = por %p730_p6, %p729_p5 }
 0x159   :  { %p732_p8 = pnand %p731_p7, %p725_p4 }
 0x210   :  { %v523_v18 = vpop.f32.mrb[0].mxu1 }
 0x211   :  { %v312_v19 = vadd.f32 %v523_v18, %v396_v17  ;;  %v306_v20 = vpop.f32.mrb[1].mxu1 }
 0x212   :  { %v307_v21 = vadd.f32 %v396_v17, %v306_v20 }
 0x213   :  { %620 = vtanh.f32 %v312_v19 }
 0x214   :  { %622 = vtanh.f32 %v307_v21  ;;  %v526_v22 = vpop.f32.mrb[2].mxu1 }
 0x215   :  { %v322_v23 = vadd.f32 %v526_v22, %v396_v17  ;;  %v316_v24 = vpop.f32.mrb[3].mxu1 }
 0x216   :  { %v317_v25 = vadd.f32 %v396_v17, %v316_v24 }
 0x217   :  { %624 = vtanh.f32 %v322_v23 }
 0x218   :  { %626 = vtanh.f32 %v317_v25  ;;  %v529_v26 = vpop.f32.mrb[4].mxu1 }
 0x219   :  { %v332_v27 = vadd.f32 %v529_v26, %v396_v17  ;;  %v326_v28 = vpop.f32.mrb[5].mxu1 }
 0x21a   :  { %v327_v29 = vadd.f32 %v396_v17, %v326_v28 }
 0x21b   :  { %628 = vtanh.f32 %v332_v27 }
 0x21c   :  { %630 = vtanh.f32 %v327_v29  ;;  %v532_v30 = vpop.f32.mrb[6].mxu1 }
 0x21d   :  { %v621_v31 = vpop.eup %620  ;;  %v342_v32 = vadd.f32 %v532_v30, %v396_v17  ;;  %v336_v33 = vpop.f32.mrb[7].mxu1 }
 0x21e   :  { %v623_v34 = vpop.eup %622  ;;  %354 = vst [vmem:[#allocation9 + $0x8] sm:$0xff] %v621_v31  ;;  %v337_v35 = vadd.f32 %v396_v17, %v336_v33 }
 0x21f   :  { %353 = vst [vmem:[#allocation9] sm:$0xff] %v623_v34  ;;  %632 = vtanh.f32 %v342_v32 }
 0x220   :  { %634 = vtanh.f32 %v337_v35 }
 0x221   :  { %v625_v36 = vpop.eup %624 }
 0x222   :  { %v627_v37 = vpop.eup %626  ;;  %356 = vst [vmem:[#allocation9 + $0x18] sm:$0xff] %v625_v36 }
 0x223   :  { %355 = vst [vmem:[#allocation9 + $0x10] sm:$0xff] %v627_v37 }
 0x225   :  { %v629_v38 = vpop.eup %628 }
 0x226   :  { %v631_v39 = vpop.eup %630  ;;  %358 = vst [vmem:[#allocation9 + $0x28] sm:$0xff] %v629_v38 }
 0x227   :  { %357 = vst [vmem:[#allocation9 + $0x20] sm:$0xff] %v631_v39 }
 0x229   :  { %v633_v40 = vpop.eup %632 }
 0x22a   :  { %v635_v41 = vpop.eup %634  ;;  %360 = vst [vmem:[#allocation9 + $0x38] sm:$0xff] %v633_v40 }
 0x22b   :  { %359 = vst [vmem:[#allocation9 + $0x30] sm:$0xff] %v635_v41 }
 0x22c   :  { %735 = shalt.err (!%p732_p8)
}
 0x22d   :  { %s736_s28 = scalar_lea.hbm %s890_s6, 1024 }
 0x22e   :  { %p737_p9 = scmp.ne.s32.totalorder %s890_s6, %s736_s28  ;;  %p740_p10 = scmp.lt.u32.totalorder %s736_s28, %s890_s6 }
 0x230   :  { %p742_p11 = pnand %p740_p10, %p737_p9 }
 0x232   :  { %745 = shalt.err (!%p742_p11)
}
 0x233   :  { %384 = dma.vmem_to_hbm [thread:$0]  %s379_s5, 1024, %s890_s6, [#allocation10], %s756_s9, %s756_s9, %s757_s10  }
 0x234   :  { %750 = dma.done.wait [#allocation4], 1024  }
 0x235   :  { %751 = vsyncadd [#allocation4], 4294966272 }
 0x236   :  { %752 = dma.done.wait [#allocation10], 1024  }
 0x237   :  { %753 = vsyncadd [#allocation10], 4294966272 }
 0x238   :  { %391 = vsyncpa [#allocation3], 1 }
 0x239   :  { %392 = vsyncpa [#allocation6], 1 }
 0x23a   :  { %393 = vsyncpa [#allocation4], 1 }
 0x23b   :  { %394 = vsyncpa [#allocation10], 1 }

// kernel: tpu_custom_call.1
= control target key start
LH: loop header
LB: loop body
LE: loop exit
PB: predicated region body
PF: predicated region fallthrough
CT: control target
= control target key end

     0   :  { %12 = vsyncpa [#allocation3], 0  ;;  %s884_s0 = inlined_call_operand.hbm [shape: f32[64,128], index: 0, kind: input, shape index: {}]   ;;  %s885_s1 = inlined_call_operand.hbm [shape: f32[128,128], index: 1, kind: input, shape index: {}]   ;;  %s886_s2 = inlined_call_operand.vmem [shape: f32[1,128], index: 2, kind: input, shape index: {}]   ;;  %s887_s3 = inlined_call_operand.hbm [shape: f32[128,128], index: 3, kind: input, shape index: {}]   ;;  %s888_s4 = inlined_call_operand.vmem [shape: f32[1,128], index: 4, kind: input, shape index: {}]   ;;  %s889_s5 = inlined_call_operand.hbm [shape: f32[64,128], index: 5, kind: output, shape index: {0}]   ;;  %s890_s6 = inlined_call_operand.hbm [shape: f32[64,128], index: 6, kind: output, shape index: {1}]  }
   0x1   :  { %13 = vsyncpa [#allocation6], 0 }
   0x2   :  { %14 = vsyncpa [#allocation4], 0 }
   0x3   :  { %15 = vsyncpa [#allocation10], 0  ;;  %s754_s21 = smov [#allocation5]   ;;  %s755_s23 = smov [#allocation2]  }
   0x4   :  { %s33_s22 = sshll.u32 %s754_s21, 4  ;;  %s21_s24 = sshll.u32 %s755_s23, 4  ;;  %s34_s22 = int_to_ptr.vmem [resolvable:$true] %s33_s22  ;;  %s796_s24 = int_to_ptr.vmem [resolvable:$true] %s21_s24 }
   0x5   :  { %s636_s27 = scalar_lea.hbm %s885_s1, 2048 }
   0x6   :  { %p637_p0 = scmp.ne.s32.totalorder %s885_s1, %s636_s27  ;;  %p640_p1 = scmp.lt.u32.totalorder %s636_s27, %s885_s1 }
   0x8   :  { %p642_p2 = pnand %p640_p1, %p637_p0 }
   0xa   :  { %645 = shalt.err (!%p642_p2)
}
   0xb   :  { %s646_s8 = scalar_lea.vmem %s34_s22, 2048  ;;  %p651_p4 = scmp.lt.s32.totalorder %s34_s22, %s34_s22 }
   0xc   :  { %p647_p3 = scmp.ne.s32.totalorder %s34_s22, %s646_s8  ;;  %p652_p5 = scmp.lt.s32.totalorder %s646_s8, %s646_s8 }
   0xe   :  { %p653_p6 = por %p652_p5, %p651_p4 }
  0x10   :  { %p654_p7 = pnand %p653_p6, %p647_p3 }
  0x12   :  { %657 = shalt.err (!%p654_p7)
}
  0x13   :  { %s756_s9 = smov 128   ;;  %s757_s10 = smov 8  }
  0x14   :  { %39 = dma.hbm_to_vmem [thread:$0]  %s885_s1, 2048, %s34_s22, [#allocation6], %s756_s9, %s756_s9, %s757_s10  }
  0x15   :  { %s658_s15 = scalar_lea.hbm %s884_s0, 1024 }
  0x16   :  { %p659_p8 = scmp.ne.s32.totalorder %s884_s0, %s658_s15  ;;  %p662_p9 = scmp.lt.u32.totalorder %s658_s15, %s884_s0 }
  0x18   :  { %p664_p10 = pnand %p662_p9, %p659_p8 }
  0x1a   :  { %667 = shalt.err (!%p664_p10)
}
  0x1b   :  { %s668_s20 = scalar_lea.vmem %s796_s24, 1024  ;;  %p673_p12 = scmp.lt.s32.totalorder %s796_s24, %s796_s24 }
  0x1c   :  { %p669_p11 = scmp.ne.s32.totalorder %s796_s24, %s668_s20  ;;  %p674_p13 = scmp.lt.s32.totalorder %s668_s20, %s668_s20 }
  0x1e   :  { %p675_p0 = por %p674_p13, %p673_p12 }
  0x20   :  { %p676_p1 = pnand %p675_p0, %p669_p11 }
  0x22   :  { %679 = shalt.err (!%p676_p1)
}
  0x23   :  { %27 = dma.hbm_to_vmem [thread:$0]  %s884_s0, 1024, %s796_s24, [#allocation3], %s756_s9, %s756_s9, %s757_s10  }
  0x24   :  { %s758_s22 = smov [#allocation7]   ;;  %s680_s27 = scalar_lea.hbm %s887_s3, 2048 }
  0x25   :  { %s47_s23 = sshll.u32 %s758_s22, 4  ;;  %p681_p2 = scmp.ne.s32.totalorder %s887_s3, %s680_s27  ;;  %s48_s23 = int_to_ptr.vmem [resolvable:$true] %s47_s23 }
  0x26   :  { %p684_p3 = scmp.lt.u32.totalorder %s680_s27, %s887_s3 }
  0x28   :  { %p686_p4 = pnand %p684_p3, %p681_p2 }
  0x2a   :  { %689 = shalt.err (!%p686_p4)
}
  0x2b   :  { %s690_s8 = scalar_lea.vmem %s48_s23, 2048  ;;  %p695_p6 = scmp.lt.s32.totalorder %s48_s23, %s48_s23 }
  0x2c   :  { %p691_p5 = scmp.ne.s32.totalorder %s48_s23, %s690_s8  ;;  %p696_p7 = scmp.lt.s32.totalorder %s690_s8, %s690_s8 }
  0x2e   :  { %p697_p8 = por %p696_p7, %p695_p6 }
  0x30   :  { %p698_p9 = pnand %p697_p8, %p691_p5 }
  0x32   :  { %701 = shalt.err (!%p698_p9)
}
  0x33   :  { %53 = dma.hbm_to_vmem [thread:$0]  %s887_s3, 2048, %s48_s23, [#allocation6], %s756_s9, %s756_s9, %s757_s10  }
  0x34   :  { %746 = dma.done.wait [#allocation3], 1024  }
  0x35   :  { %747 = vsyncadd [#allocation3], 4294966272 }
  0x36   :  { %748 = dma.done.wait [#allocation6], 4096  }
  0x37   :  { %749 = vsyncadd [#allocation6], 4294963200  ;;  %v73_v0 = vld [vmem:[#allocation5] sm:$0xff]  ;;  %v74_v1 = vld [vmem:[#allocation5 + $0x8] sm:$0xff] }
  0x38   :  { %v75_v2 = vld [vmem:[#allocation5 + $0x10] sm:$0xff]  ;;  %v533_v3 = vpack.c.bf16 %v74_v1, %v73_v0  ;;  %v76_v4 = vld [vmem:[#allocation5 + $0x18] sm:$0xff]  ;;  %v77_v6 = vld [vmem:[#allocation5 + $0x20] sm:$0xff] }
  0x39   :  { %v537_v5 = vpack.c.bf16 %v76_v4, %v75_v2  ;;  %v78_v7 = vld [vmem:[#allocation5 + $0x28] sm:$0xff]  ;;  %v65_v9 = vld [vmem:[#allocation2] sm:$0xff]  ;;  %v79_v10 = vld [vmem:[#allocation5 + $0x30] sm:$0xff] }
  0x3a   :  { %534 = vmatprep.subr.bf16.mxu0 %v533_v3  ;;  %v541_v8 = vpack.c.bf16 %v78_v7, %v77_v6  ;;  %v80_v11 = vld [vmem:[#allocation5 + $0x38] sm:$0xff]  ;;  %477 = vmatprep.mubr.f32.mxu0 %v65_v9  ;;  %v217_v12 = vld [vmem:[#allocation7] sm:$0xff]  ;;  %v218_v13 = vld [vmem:[#allocation7 + $0x8] sm:$0xff] }
  0x3b   :  { %536 = vmatpush3.bf16.msra.mxu0 %v533_v3  ;;  %v219_v14 = vld [vmem:[#allocation7 + $0x10] sm:$0xff]  ;;  %v545_v15 = vpack.c.bf16 %v80_v11, %v79_v10  ;;  %v81_v16 = vld [vmem:[#allocation5 + $0x40] sm:$0xff]  ;;  %v565_v17 = vpack.c.bf16 %v218_v13, %v217_v12  ;;  %v220_v18 = vld [vmem:[#allocation7 + $0x18] sm:$0xff] }
  0x3c   :  { %538 = vmatprep.subr.bf16.mxu0 %v537_v5  ;;  %v82_v19 = vld [vmem:[#allocation5 + $0x48] sm:$0xff]  ;;  %v569_v20 = vpack.c.bf16 %v220_v18, %v219_v14  ;;  %v221_v21 = vld [vmem:[#allocation7 + $0x20] sm:$0xff]  ;;  %v83_v24 = vld [vmem:[#allocation5 + $0x50] sm:$0xff] }
  0x3d   :  { %v222_v22 = vld [vmem:[#allocation7 + $0x28] sm:$0xff]  ;;  %566 = vmatprep.subr.bf16.mxu1 %v565_v17  ;;  %v549_v23 = vpack.c.bf16 %v82_v19, %v81_v16  ;;  %v84_v26 = vld [vmem:[#allocation5 + $0x58] sm:$0xff]  ;;  %v223_v27 = vld [vmem:[#allocation7 + $0x30] sm:$0xff] }
  0x3e   :  { %568 = vmatpush3.bf16.msra.mxu1 %v565_v17  ;;  %v573_v25 = vpack.c.bf16 %v222_v22, %v221_v21  ;;  %v224_v28 = vld [vmem:[#allocation7 + $0x38] sm:$0xff]  ;;  %v553_v29 = vpack.c.bf16 %v84_v26, %v83_v24  ;;  %v85_v31 = vld [vmem:[#allocation5 + $0x60] sm:$0xff]  ;;  %v86_v32 = vld [vmem:[#allocation5 + $0x68] sm:$0xff] }
  0x3f   :  { %540 = vmatpush3.bf16.msra.mxu0 %v537_v5  ;;  %570 = vmatprep.subr.bf16.mxu1 %v569_v20  ;;  %v577_v30 = vpack.c.bf16 %v224_v28, %v223_v27  ;;  %v557_v33 = vpack.c.bf16 %v86_v32, %v85_v31  ;;  %v87_v34 = vld [vmem:[#allocation5 + $0x70] sm:$0xff]  ;;  %v88_v35 = vld [vmem:[#allocation5 + $0x78] sm:$0xff]  ;;  %v66_v37 = vld [vmem:[#allocation2 + $0x8] sm:$0xff] }
  0x40   :  { %542 = vmatprep.subr.bf16.mxu0 %v541_v8  ;;  %v561_v36 = vpack.c.bf16 %v88_v35, %v87_v34  ;;  %v67_v38 = vld [vmem:[#allocation2 + $0x10] sm:$0xff]  ;;  %v68_v39 = vld [vmem:[#allocation2 + $0x18] sm:$0xff]  ;;  %v69_v40 = vld [vmem:[#allocation2 + $0x20] sm:$0xff] }
  0x41   :  { %v70_v41 = vld [vmem:[#allocation2 + $0x28] sm:$0xff]  ;;  %v71_v42 = vld [vmem:[#allocation2 + $0x30] sm:$0xff]  ;;  %v72_v43 = vld [vmem:[#allocation2 + $0x38] sm:$0xff] }
  0x42   :  { %572 = vmatpush3.bf16.msra.mxu1 %v569_v20  ;;  %v225_v44 = vld [vmem:[#allocation7 + $0x40] sm:$0xff]  ;;  %v226_v45 = vld [vmem:[#allocation7 + $0x48] sm:$0xff]  ;;  %v227_v47 = vld [vmem:[#allocation7 + $0x50] sm:$0xff] }
  0x43   :  { %544 = vmatpush3.bf16.msra.mxu0 %v541_v8  ;;  %574 = vmatprep.subr.bf16.mxu1 %v573_v25  ;;  %v581_v46 = vpack.c.bf16 %v226_v45, %v225_v44  ;;  %v228_v48 = vld [vmem:[#allocation7 + $0x58] sm:$0xff]  ;;  %v229_v50 = vld [vmem:[#allocation7 + $0x60] sm:$0xff]  ;;  %v230_v51 = vld [vmem:[#allocation7 + $0x68] sm:$0xff] }
  0x44   :  { %546 = vmatprep.subr.bf16.mxu0 %v545_v15  ;;  %v585_v49 = vpack.c.bf16 %v228_v48, %v227_v47  ;;  %v589_v52 = vpack.c.bf16 %v230_v51, %v229_v50  ;;  %v231_v53 = vld [vmem:[#allocation7 + $0x70] sm:$0xff]  ;;  %v232_v54 = vld [vmem:[#allocation7 + $0x78] sm:$0xff]  ;;  %v395_v56 = vld [vmem:[%s886_s2] ss:$0 sm:$0xff]  ;;  %s759_s2 = smov [#allocation8]  }
  0x45   :  { %v593_v55 = vpack.c.bf16 %v232_v54, %v231_v53  ;;  %s366_s12 = sshll.u32 %s759_s2, 4  ;;  %s367_s12 = int_to_ptr.vmem [resolvable:$true] %s366_s12 }
  0x46   :  { %576 = vmatpush3.bf16.msra.mxu1 %v573_v25  ;;  %s702_s13 = scalar_lea.vmem %s367_s12, 1024  ;;  %p707_p11 = scmp.lt.s32.totalorder %s367_s12, %s367_s12 }
  0x47   :  { %548 = vmatpush3.bf16.msra.mxu0 %v545_v15  ;;  %578 = vmatprep.subr.bf16.mxu1 %v577_v30  ;;  %p703_p10 = scmp.ne.s32.totalorder %s367_s12, %s702_s13  ;;  %p708_p12 = scmp.lt.s32.totalorder %s702_s13, %s702_s13 }
  0x48   :  { %550 = vmatprep.subr.bf16.mxu0 %v549_v23 }
  0x49   :  { %p709_p13 = por %p708_p12, %p707_p11 }
  0x4a   :  { %580 = vmatpush3.bf16.msra.mxu1 %v577_v30 }
  0x4b   :  { %552 = vmatpush3.bf16.msra.mxu0 %v549_v23  ;;  %582 = vmatprep.subr.bf16.mxu1 %v581_v46  ;;  %p710_p0 = pnand %p709_p13, %p703_p10 }
  0x4c   :  { %554 = vmatprep.subr.bf16.mxu0 %v553_v29 }
  0x4e   :  { %584 = vmatpush3.bf16.msra.mxu1 %v581_v46 }
  0x4f   :  { %556 = vmatpush3.bf16.msra.mxu0 %v553_v29  ;;  %586 = vmatprep.subr.bf16.mxu1 %v585_v49 }
  0x50   :  { %558 = vmatprep.subr.bf16.mxu0 %v557_v33 }
  0x52   :  { %588 = vmatpush3.bf16.msra.mxu1 %v585_v49 }
  0x53   :  { %560 = vmatpush3.bf16.msra.mxu0 %v557_v33  ;;  %590 = vmatprep.subr.bf16.mxu1 %v589_v52 }
  0x54   :  { %562 = vmatprep.subr.bf16.mxu0 %v561_v36 }
  0x56   :  { %592 = vmatpush3.bf16.msra.mxu1 %v589_v52 }
  0x57   :  { %564 = vmatpush3.bf16.msra.mxu0 %v561_v36  ;;  %594 = vmatprep.subr.bf16.mxu1 %v593_v55 }
  0x5a   :  { %478 = vmatmul.mubr.f32.vlgmr.msra.gmra.mrb[0].mxu0 %v66_v37  ;;  %596 = vmatpush3.bf16.msra.mxu1 %v593_v55 }
  0x5b   :  { %480 = vmatprep.mubr.f32.mxu0 %v67_v38 }
  0x5e   :  { %481 = vmatmul.mubr.f32.gmra.mrb[2].mxu0 %v68_v39 }
  0x5f   :  { %483 = vmatprep.mubr.f32.mxu0 %v69_v40 }
  0x62   :  { %484 = vmatmul.mubr.f32.gmra.mrb[4].mxu0 %v70_v41 }
  0x63   :  { %486 = vmatprep.mubr.f32.mxu0 %v71_v42 }
  0x66   :  { %487 = vmatmul.mubr.f32.gmra.mrb[6].mxu0 %v72_v43 }
 0x12d   :  { %v479_v57 = vpop.f32.mrb[0].mxu0 }
 0x12e   :  { %v168_v58 = vadd.f32 %v479_v57, %v395_v56  ;;  %v162_v59 = vpop.f32.mrb[1].mxu0 }
 0x12f   :  { %v163_v60 = vadd.f32 %v395_v56, %v162_v59 }
 0x130   :  { %604 = vtanh.f32 %v168_v58 }
 0x131   :  { %606 = vtanh.f32 %v163_v60  ;;  %v482_v61 = vpop.f32.mrb[2].mxu0 }
 0x132   :  { %v178_v62 = vadd.f32 %v482_v61, %v395_v56  ;;  %v172_v63 = vpop.f32.mrb[3].mxu0 }
 0x133   :  { %v173_v0 = vadd.f32 %v395_v56, %v172_v63 }
 0x134   :  { %608 = vtanh.f32 %v178_v62 }
 0x135   :  { %610 = vtanh.f32 %v173_v0  ;;  %v485_v1 = vpop.f32.mrb[4].mxu0 }
 0x136   :  { %v188_v2 = vadd.f32 %v485_v1, %v395_v56  ;;  %v182_v3 = vpop.f32.mrb[5].mxu0 }
 0x137   :  { %v183_v4 = vadd.f32 %v395_v56, %v182_v3 }
 0x138   :  { %612 = vtanh.f32 %v188_v2 }
 0x139   :  { %614 = vtanh.f32 %v183_v4  ;;  %v488_v5 = vpop.f32.mrb[6].mxu0 }
 0x13a   :  { %v605_v6 = vpop.eup %604  ;;  %v198_v7 = vadd.f32 %v488_v5, %v395_v56  ;;  %v192_v8 = vpop.f32.mrb[7].mxu0 }
 0x13b   :  { %v607_v9 = vpop.eup %606  ;;  %210 = vst [vmem:[#allocation8 + $0x8] sm:$0xff] %v605_v6  ;;  %v193_v10 = vadd.f32 %v395_v56, %v192_v8 }
 0x13c   :  { %209 = vst [vmem:[#allocation8] sm:$0xff] %v607_v9  ;;  %616 = vtanh.f32 %v198_v7  ;;  %521 = vmatprep.mubr.f32.mxu1 %v607_v9 }
 0x13d   :  { %618 = vtanh.f32 %v193_v10  ;;  %522 = vmatmul.mubr.f32.vlgmr.msra.gmra.mrb[0].mxu1 %v605_v6 }
 0x13e   :  { %v609_v11 = vpop.eup %608 }
 0x13f   :  { %v611_v12 = vpop.eup %610  ;;  %212 = vst [vmem:[#allocation8 + $0x18] sm:$0xff] %v609_v11 }
 0x140   :  { %211 = vst [vmem:[#allocation8 + $0x10] sm:$0xff] %v611_v12  ;;  %524 = vmatprep.mubr.f32.mxu1 %v611_v12 }
 0x141   :  { %525 = vmatmul.mubr.f32.gmra.mrb[2].mxu1 %v609_v11 }
 0x142   :  { %v613_v13 = vpop.eup %612 }
 0x143   :  { %v615_v14 = vpop.eup %614  ;;  %214 = vst [vmem:[#allocation8 + $0x28] sm:$0xff] %v613_v13 }
 0x144   :  { %213 = vst [vmem:[#allocation8 + $0x20] sm:$0xff] %v615_v14  ;;  %527 = vmatprep.mubr.f32.mxu1 %v615_v14 }
 0x145   :  { %528 = vmatmul.mubr.f32.gmra.mrb[4].mxu1 %v613_v13 }
 0x146   :  { %v617_v15 = vpop.eup %616 }
 0x147   :  { %v619_v16 = vpop.eup %618  ;;  %216 = vst [vmem:[#allocation8 + $0x38] sm:$0xff] %v617_v15 }
 0x148   :  { %215 = vst [vmem:[#allocation8 + $0x30] sm:$0xff] %v619_v16  ;;  %530 = vmatprep.mubr.f32.mxu1 %v619_v16 }
 0x149   :  { %531 = vmatmul.mubr.f32.gmra.mrb[6].mxu1 %v617_v15 }
 0x14a   :  { %713 = shalt.err (!%p710_p0)
}
 0x14b   :  { %s714_s16 = scalar_lea.hbm %s889_s5, 1024 }
 0x14c   :  { %p715_p1 = scmp.ne.s32.totalorder %s889_s5, %s714_s16  ;;  %p718_p2 = scmp.lt.u32.totalorder %s714_s16, %s889_s5 }
 0x14e   :  { %p720_p3 = pnand %p718_p2, %p715_p1 }
 0x150   :  { %723 = shalt.err (!%p720_p3)
}
 0x151   :  { %372 = dma.vmem_to_hbm [thread:$0]  %s367_s12, 1024, %s889_s5, [#allocation4], %s756_s9, %s756_s9, %s757_s10  }
 0x152   :  { %v396_v17 = vld [vmem:[%s888_s4] ss:$0 sm:$0xff]  ;;  %s760_s4 = smov [#allocation9]  }
 0x153   :  { %s378_s5 = sshll.u32 %s760_s4, 4  ;;  %s379_s5 = int_to_ptr.vmem [resolvable:$true] %s378_s5 }
 0x154   :  { %s724_s25 = scalar_lea.vmem %s379_s5, 1024  ;;  %p729_p5 = scmp.lt.s32.totalorder %s379_s5, %s379_s5 }
 0x155   :  { %p725_p4 = scmp.ne.s32.totalorder %s379_s5, %s724_s25  ;;  %p730_p6 = scmp.lt.s32.totalorder %s724_s25, %s724_s25 }
 0x157   :  { %p731_p7 = por %p730_p6, %p729_p5 }
 0x159   :  { %p732_p8 = pnand %p731_p7, %p725_p4 }
 0x210   :  { %v523_v18 = vpop.f32.mrb[0].mxu1 }
 0x211   :  { %v312_v19 = vadd.f32 %v523_v18, %v396_v17  ;;  %v306_v20 = vpop.f32.mrb[1].mxu1 }
 0x212   :  { %v307_v21 = vadd.f32 %v396_v17, %v306_v20 }
 0x213   :  { %620 = vtanh.f32 %v312_v19 }
 0x214   :  { %622 = vtanh.f32 %v307_v21  ;;  %v526_v22 = vpop.f32.mrb[2].mxu1 }
 0x215   :  { %v322_v23 = vadd.f32 %v526_v22, %v396_v17  ;;  %v316_v24 = vpop.f32.mrb[3].mxu1 }
 0x216   :  { %v317_v25 = vadd.f32 %v396_v17, %v316_v24 }
 0x217   :  { %624 = vtanh.f32 %v322_v23 }
 0x218   :  { %626 = vtanh.f32 %v317_v25  ;;  %v529_v26 = vpop.f32.mrb[4].mxu1 }
 0x219   :  { %v332_v27 = vadd.f32 %v529_v26, %v396_v17  ;;  %v326_v28 = vpop.f32.mrb[5].mxu1 }
 0x21a   :  { %v327_v29 = vadd.f32 %v396_v17, %v326_v28 }
 0x21b   :  { %628 = vtanh.f32 %v332_v27 }
 0x21c   :  { %630 = vtanh.f32 %v327_v29  ;;  %v532_v30 = vpop.f32.mrb[6].mxu1 }
 0x21d   :  { %v621_v31 = vpop.eup %620  ;;  %v342_v32 = vadd.f32 %v532_v30, %v396_v17  ;;  %v336_v33 = vpop.f32.mrb[7].mxu1 }
 0x21e   :  { %v623_v34 = vpop.eup %622  ;;  %354 = vst [vmem:[#allocation9 + $0x8] sm:$0xff] %v621_v31  ;;  %v337_v35 = vadd.f32 %v396_v17, %v336_v33 }
 0x21f   :  { %353 = vst [vmem:[#allocation9] sm:$0xff] %v623_v34  ;;  %632 = vtanh.f32 %v342_v32 }
 0x220   :  { %634 = vtanh.f32 %v337_v35 }
 0x221   :  { %v625_v36 = vpop.eup %624 }
 0x222   :  { %v627_v37 = vpop.eup %626  ;;  %356 = vst [vmem:[#allocation9 + $0x18] sm:$0xff] %v625_v36 }
 0x223   :  { %355 = vst [vmem:[#allocation9 + $0x10] sm:$0xff] %v627_v37 }
 0x225   :  { %v629_v38 = vpop.eup %628 }
 0x226   :  { %v631_v39 = vpop.eup %630  ;;  %358 = vst [vmem:[#allocation9 + $0x28] sm:$0xff] %v629_v38 }
 0x227   :  { %357 = vst [vmem:[#allocation9 + $0x20] sm:$0xff] %v631_v39 }
 0x229   :  { %v633_v40 = vpop.eup %632 }
 0x22a   :  { %v635_v41 = vpop.eup %634  ;;  %360 = vst [vmem:[#allocation9 + $0x38] sm:$0xff] %v633_v40 }
 0x22b   :  { %359 = vst [vmem:[#allocation9 + $0x30] sm:$0xff] %v635_v41 }
 0x22c   :  { %735 = shalt.err (!%p732_p8)
}
 0x22d   :  { %s736_s28 = scalar_lea.hbm %s890_s6, 1024 }
 0x22e   :  { %p737_p9 = scmp.ne.s32.totalorder %s890_s6, %s736_s28  ;;  %p740_p10 = scmp.lt.u32.totalorder %s736_s28, %s890_s6 }
 0x230   :  { %p742_p11 = pnand %p740_p10, %p737_p9 }
 0x232   :  { %745 = shalt.err (!%p742_p11)
}
 0x233   :  { %384 = dma.vmem_to_hbm [thread:$0]  %s379_s5, 1024, %s890_s6, [#allocation10], %s756_s9, %s756_s9, %s757_s10  }
 0x234   :  { %750 = dma.done.wait [#allocation4], 1024  }
 0x235   :  { %751 = vsyncadd [#allocation4], 4294966272 }
 0x236   :  { %752 = dma.done.wait [#allocation10], 1024  }
 0x237   :  { %753 = vsyncadd [#allocation10], 4294966272 }
 0x238   :  { %391 = vsyncpa [#allocation3], 1 }
 0x239   :  { %392 = vsyncpa [#allocation6], 1 }
 0x23a   :  { %393 = vsyncpa [#allocation4], 1 }
 0x23b   :  { %394 = vsyncpa [#allocation10], 1 }

</bundles_post_ra>
